<compile_context>
chip_gen: v6e
topology: v6e:2x2x1
jax: 0.10.0
libtpu: 0.0.40
codegen_flags: <defaults>
</compile_context>

<pallas_src>
import math
import numpy as np

import jax
import jax.numpy as jnp
from jax.experimental import pallas as pl
from jax.experimental.pallas import tpu as pltpu

BN_EPS = 1e-5


def _silu(v):
    # Exact sigmoid (review: approx reciprocal bought nothing at these shapes).
    return v * (1.0 / (1.0 + jnp.exp(-v)))


def _bn_silu_linear2(z, w2, b2):
    # BatchNorm1d(track_running_stats=False): batch statistics, biased variance,
    # identity affine. Two-pass variance (z - mean)^2 for numerical safety.
    inv_n = 1.0 / z.shape[0]
    mean = jnp.sum(z, axis=0, keepdims=True) * inv_n
    zc = z - mean
    var = jnp.sum(zc * zc, axis=0, keepdims=True) * inv_n
    zn = zc * jax.lax.rsqrt(var + BN_EPS)
    h = _silu(zn)
    return jnp.dot(h, w2, preferred_element_type=jnp.float32) + b2


def _classifier_t_kernel(x_ref, t_ref, te_w1_ref, w_ref, b_ref, o_ref):
    # x_ref: [N, D]  t_ref: [N, 1]  te_w1_ref: [2D, D] bf16
    # w_ref: [3D, D] bf16 = [te_w2; w1; w2]   b_ref: [5, D] f32 =
    # [te_b1; te_b2; b1; b2; freqs]
    d = w_ref.shape[1]
    half = te_w1_ref.shape[0] // 2

    b = b_ref[...]
    te_b1, te_b2, b1, b2, freqs = b[0:1], b[1:2], b[2:3], b[3:4], b[4:5]

    te_w1 = te_w1_ref[...].astype(jnp.float32)   # bf16 in HBM, f32 math in-core
    w = w_ref[...].astype(jnp.float32)
    te_w2, w1, w2 = w[0:d], w[d:2 * d], w[2 * d:3 * d]

    # Sinusoidal timestep embedding: emb0 = [cos(t*freqs) | sin(t*freqs)].
    # Instead of a 64-lane-offset concat, feed the two halves through the
    # (sublane-)split first time_embed weight: identical math to the reference.
    args = t_ref[...] * freqs                                    # [N, half]
    h = _silu(jnp.dot(jnp.cos(args), te_w1[:half],
                      preferred_element_type=jnp.float32)
              + jnp.dot(jnp.sin(args), te_w1[half:],
                        preferred_element_type=jnp.float32)
              + te_b1)
    emb = jnp.dot(h, te_w2, preferred_element_type=jnp.float32) + te_b2

    z = (jnp.dot(x_ref[...] + emb, w1, preferred_element_type=jnp.float32)
         + b1)
    o_ref[...] = _bn_silu_linear2(z, w2, b2).astype(o_ref.dtype)


def _classifier_kernel(x_ref, w_ref, b_ref, o_ref):
    # t is None path: linear1 -> BN -> SiLU -> linear2 (reuses the packed slabs).
    d = w_ref.shape[1]
    b = b_ref[...]
    b1, b2 = b[2:3], b[3:4]
    w = w_ref[...].astype(jnp.float32)
    w1, w2 = w[d:2 * d], w[2 * d:3 * d]

    z = jnp.dot(x_ref[...], w1, preferred_element_type=jnp.float32) + b1
    o_ref[...] = _bn_silu_linear2(z, w2, b2).astype(o_ref.dtype)


def init_params(key, input_dim=64, output_dim=64, max_period=10000.0):
    """Deterministic init matching the module's shapes.

    torch weights are [out, in]; stored pre-transposed as [in, out].
    xavier_uniform weights, standard nn.Linear uniform biases.
    Weights packed into bf16 slabs; biases + sinusoidal freqs packed into one
    f32 slab so the kernel takes few, consolidated DMAs.
    """
    assert input_dim == output_dim, "packed-slab layout assumes square dims"
    ks = jax.random.split(key, 8)

    def xavier(k, fan_in, fan_out):
        bound = math.sqrt(6.0 / (fan_in + fan_out))
        return jax.random.uniform(k, (fan_in, fan_out), jnp.float32, -bound, bound)

    def bias(k, fan_in, out):
        bound = 1.0 / math.sqrt(fan_in)
        return jax.random.uniform(k, (out,), jnp.float32, -bound, bound)

    w1 = xavier(ks[0], input_dim, output_dim)
    b1 = bias(ks[1], input_dim, output_dim)
    w2 = xavier(ks[2], output_dim, output_dim)
    b2 = bias(ks[3], output_dim, output_dim)
    te_w1 = xavier(ks[4], output_dim * 2, input_dim)
    te_b1 = bias(ks[5], output_dim * 2, input_dim)
    te_w2 = xavier(ks[6], input_dim, input_dim)
    te_b2 = bias(ks[7], input_dim, input_dim)

    half = output_dim
    freqs = jnp.exp(-math.log(max_period)
                    * jnp.arange(half, dtype=jnp.float32) / half)

    return dict(
        te_w1=te_w1.astype(jnp.bfloat16),                              # (2D, D)
        w_cat=jnp.concatenate([te_w2, w1, w2], 0).astype(jnp.bfloat16),  # (3D, D)
        b_cat=jnp.stack([te_b1, te_b2, b1, b2, freqs], 0),             # (5, D) f32
    )


def classifier_forward(params, x, t=None):
    """Forward pass.

    x: [N, D] or [steps, N, D]; t: [N] / [steps, N] or None.
    Stack independent diffusion steps along the leading axis so parameters are
    DMA'd once and stay VMEM-resident across the whole grid (the dominant cost
    at these shapes is weight DMA + launch, not compute).
    """
    squeeze = x.ndim == 2
    x = jnp.asarray(x, jnp.float32)
    if squeeze:
        x = x[None]
        if t is not None:
            t = jnp.asarray(t)[None]
    steps, n, d_in = x.shape
    d_out = params["w_cat"].shape[1]

    def step_spec(width):
        return pl.BlockSpec((None, n, width), lambda s: (s, 0, 0))

    def const_spec(arr):
        # Constant index_map: parameter block never changes -> single DMA,
        # VMEM-resident across all grid steps.
        return pl.BlockSpec(arr.shape, lambda s: (0, 0))

    out_shape = jax.ShapeDtypeStruct((steps, n, d_out), jnp.float32)
    cp = pltpu.CompilerParams(dimension_semantics=("parallel",))

    if t is None:
        out = pl.pallas_call(
            _classifier_kernel,
            grid=(steps,),
            out_shape=out_shape,
            in_specs=[step_spec(d_in),
                      const_spec(params["w_cat"]),
                      const_spec(params["b_cat"])],
            out_specs=step_spec(d_out),
            compiler_params=cp,
        )(x, params["w_cat"], params["b_cat"])
    else:
        t3 = jnp.asarray(t, jnp.float32).reshape(steps, n, 1)
        out = pl.pallas_call(
            _classifier_t_kernel,
            grid=(steps,),
            out_shape=out_shape,
            in_specs=[step_spec(d_in),
                      step_spec(1),
                      const_spec(params["te_w1"]),
                      const_spec(params["w_cat"]),
                      const_spec(params["b_cat"])],
            out_specs=step_spec(d_out),
            compiler_params=cp,
        )(x, t3, params["te_w1"], params["w_cat"], params["b_cat"])

    return out[0] if squeeze else out


def classifier_ref(params, x, t=None):
    """Pure-JAX reference mirroring the PyTorch forward (f32, exact dots)."""
    hi = jax.lax.Precision.HIGHEST
    w = params["w_cat"].astype(jnp.float32)
    d = w.shape[1]
    te_w2, w1, w2 = w[:d], w[d:2 * d], w[2 * d:]
    b = params["b_cat"]
    te_b1, te_b2, b1, b2, freqs = b[0], b[1], b[2], b[3], b[4]
    te_w1 = params["te_w1"].astype(jnp.float32)

    if t is not None:
        a = t.astype(jnp.float32)[:, None] * freqs[None]
        emb0 = jnp.concatenate([jnp.cos(a), jnp.sin(a)], axis=-1)
        h = jax.nn.silu(jnp.dot(emb0, te_w1, precision=hi) + te_b1)
        emb = jnp.dot(h, te_w2, precision=hi) + te_b2
        x = x + emb
    z = jnp.dot(x, w1, precision=hi) + b1
    mean = z.mean(0, keepdims=True)
    var = ((z - mean) ** 2).mean(0, keepdims=True)
    zn = (z - mean) / jnp.sqrt(var + BN_EPS)
    return jnp.dot(jax.nn.silu(zn), w2, precision=hi) + b2


if __name__ == "__main__":
    key = jax.random.PRNGKey(0)
    kp, kx, kt, kxs, kts = jax.random.split(key, 5)

    input_dim = output_dim = 64
    batch = 8
    steps = 4

    params = init_params(kp, input_dim, output_dim)

    # Single batch, with and without timestep conditioning.
    x = jax.random.normal(kx, (batch, input_dim), jnp.float32)
    t = jax.random.uniform(kt, (batch,), jnp.float32, 0.0, 100.0)
    out_t = jax.block_until_ready(classifier_forward(params, x, t))
    out_n = jax.block_until_ready(classifier_forward(params, x, None))

    # Fused multi-step call: one pallas_call, grid over steps, weights DMA'd once.
    xs = jax.random.normal(kxs, (steps, batch, input_dim), jnp.float32)
    ts = jax.random.uniform(kts, (steps, batch), jnp.float32, 0.0, 100.0)
    out_s = jax.block_until_ready(classifier_forward(params, xs, ts))

    ref_t = classifier_ref(params, x, t)
    ref_n = classifier_ref(params, x, None)
    ref_s = jnp.stack([classifier_ref(params, xs[i], ts[i]) for i in range(steps)])

    # Tolerance tightened from rev 2 (2e-3 -> 1e-3): the approximate reciprocal
    # and pi/2-shifted cos are gone; remaining deltas come from in-kernel vs XLA
    # transcendental implementations and MXU f32 matmul passes.
    np.testing.assert_allclose(np.asarray(out_t), np.asarray(ref_t), rtol=1e-3, atol=1e-3)
    np.testing.assert_allclose(np.asarray(out_n), np.asarray(ref_n), rtol=1e-3, atol=1e-3)
    np.testing.assert_allclose(np.asarray(out_s), np.asarray(ref_s), rtol=1e-3, atol=1e-3)

    print("KERNEL_OK")
</pallas_src>

<mosaic_0001>
module attributes {stable_mosaic.version = 11 : i64} {
  func.func @_classifier_t_kernel(%arg0: i32, %arg1: memref<1x8x64xf32, #tpu.memory_space<vmem>>, %arg2: memref<1x8x1xf32, #tpu.memory_space<vmem>>, %arg3: memref<128x64xbf16, #tpu.memory_space<vmem>>, %arg4: memref<192x64xbf16, #tpu.memory_space<vmem>>, %arg5: memref<5x64xf32, #tpu.memory_space<vmem>>, %arg6: memref<1x8x64xf32, #tpu.memory_space<vmem>>) attributes {dimension_semantics = [#tpu.dimension_semantics<parallel>], iteration_bounds = array<i64: 1>, scalar_prefetch = 0 : i64, scratch_operands = 0 : i64, tpu.core_type = #tpu.core_type<tc>, window_params = [{transform_indices = @transform_0, window_bounds = array<i64: 1, 8, 64>}, {transform_indices = @transform_1, window_bounds = array<i64: 1, 8, 1>}, {pipeline_mode = #tpu.pipeline_mode<synchronous>, transform_indices = @transform_2, window_bounds = array<i64: 128, 64>}, {pipeline_mode = #tpu.pipeline_mode<synchronous>, transform_indices = @transform_3, window_bounds = array<i64: 192, 64>}, {pipeline_mode = #tpu.pipeline_mode<synchronous>, transform_indices = @transform_4, window_bounds = array<i64: 5, 64>}, {transform_indices = @transform_5, window_bounds = array<i64: 1, 8, 64>}]} {
    %c0 = arith.constant 0 : index
    %c0_0 = arith.constant 0 : index
    %0 = vector.load %arg5[%c0, %c0_0] : memref<5x64xf32, #tpu.memory_space<vmem>>, vector<5x64xf32>
    %1 = vector.extract_strided_slice %0 {offsets = [0, 0], sizes = [1, 64], strides = [1, 1]} : vector<5x64xf32> to vector<1x64xf32>
    %2 = vector.extract_strided_slice %0 {offsets = [1, 0], sizes = [1, 64], strides = [1, 1]} : vector<5x64xf32> to vector<1x64xf32>
    %3 = vector.extract_strided_slice %0 {offsets = [2, 0], sizes = [1, 64], strides = [1, 1]} : vector<5x64xf32> to vector<1x64xf32>
    %4 = vector.extract_strided_slice %0 {offsets = [3, 0], sizes = [1, 64], strides = [1, 1]} : vector<5x64xf32> to vector<1x64xf32>
    %5 = vector.extract_strided_slice %0 {offsets = [4, 0], sizes = [1, 64], strides = [1, 1]} : vector<5x64xf32> to vector<1x64xf32>
    %c0_1 = arith.constant 0 : index
    %c0_2 = arith.constant 0 : index
    %6 = vector.load %arg3[%c0_1, %c0_2] : memref<128x64xbf16, #tpu.memory_space<vmem>>, vector<128x64xbf16>
    %7 = arith.extf %6 : vector<128x64xbf16> to vector<128x64xf32>
    %c0_3 = arith.constant 0 : index
    %c0_4 = arith.constant 0 : index
    %8 = vector.load %arg4[%c0_3, %c0_4] : memref<192x64xbf16, #tpu.memory_space<vmem>>, vector<192x64xbf16>
    %9 = arith.extf %8 : vector<192x64xbf16> to vector<192x64xf32>
    %10 = vector.extract_strided_slice %9 {offsets = [0, 0], sizes = [64, 64], strides = [1, 1]} : vector<192x64xf32> to vector<64x64xf32>
    %11 = vector.extract_strided_slice %9 {offsets = [64, 0], sizes = [64, 64], strides = [1, 1]} : vector<192x64xf32> to vector<64x64xf32>
    %12 = vector.extract_strided_slice %9 {offsets = [128, 0], sizes = [64, 64], strides = [1, 1]} : vector<192x64xf32> to vector<64x64xf32>
    %c0_5 = arith.constant 0 : index
    %c0_6 = arith.constant 0 : index
    %c0_7 = arith.constant 0 : index
    %13 = vector.load %arg2[%c0_5, %c0_6, %c0_7] : memref<1x8x1xf32, #tpu.memory_space<vmem>>, vector<1x8x1xf32>
    %14 = vector.shape_cast %13 : vector<1x8x1xf32> to vector<8x1xf32>
    %15 = vector.broadcast %14 : vector<8x1xf32> to vector<8x64xf32>
    %16 = vector.broadcast %5 : vector<1x64xf32> to vector<8x64xf32>
    %17 = arith.mulf %15, %16 : vector<8x64xf32>
    %18 = math.cos %17 : vector<8x64xf32>
    %19 = vector.extract_strided_slice %7 {offsets = [0, 0], sizes = [64, 64], strides = [1, 1]} : vector<128x64xf32> to vector<64x64xf32>
    %cst = arith.constant dense<0.000000e+00> : vector<8x64xf32>
    %20 = tpu.matmul %18, %19, %cst {dimension_numbers = #tpu.dot_dimension_numbers<[1], [0], [0], [1], [0, 0, 1, 1], [], []>} : vector<8x64xf32>, vector<64x64xf32>, vector<8x64xf32> -> vector<8x64xf32>
    %21 = math.sin %17 : vector<8x64xf32>
    %22 = vector.extract_strided_slice %7 {offsets = [64, 0], sizes = [64, 64], strides = [1, 1]} : vector<128x64xf32> to vector<64x64xf32>
    %cst_8 = arith.constant dense<0.000000e+00> : vector<8x64xf32>
    %23 = tpu.matmul %21, %22, %cst_8 {dimension_numbers = #tpu.dot_dimension_numbers<[1], [0], [0], [1], [0, 0, 1, 1], [], []>} : vector<8x64xf32>, vector<64x64xf32>, vector<8x64xf32> -> vector<8x64xf32>
    %24 = arith.addf %20, %23 : vector<8x64xf32>
    %25 = vector.broadcast %1 : vector<1x64xf32> to vector<8x64xf32>
    %26 = arith.addf %24, %25 : vector<8x64xf32>
    %cst_9 = arith.constant 0.000000e+00 : f32
    %27 = vector.broadcast %cst_9 : f32 to vector<8x64xf32>
    %28 = arith.subf %27, %26 : vector<8x64xf32>
    %29 = math.exp %28 : vector<8x64xf32>
    %cst_10 = arith.constant 1.000000e+00 : f32
    %30 = vector.broadcast %cst_10 : f32 to vector<8x64xf32>
    %31 = arith.addf %30, %29 : vector<8x64xf32>
    %cst_11 = arith.constant 1.000000e+00 : f32
    %32 = vector.broadcast %cst_11 : f32 to vector<8x64xf32>
    %33 = arith.divf %32, %31 : vector<8x64xf32>
    %34 = arith.mulf %26, %33 : vector<8x64xf32>
    %cst_12 = arith.constant dense<0.000000e+00> : vector<8x64xf32>
    %35 = tpu.matmul %34, %10, %cst_12 {dimension_numbers = #tpu.dot_dimension_numbers<[1], [0], [0], [1], [0, 0, 1, 1], [], []>} : vector<8x64xf32>, vector<64x64xf32>, vector<8x64xf32> -> vector<8x64xf32>
    %36 = vector.broadcast %2 : vector<1x64xf32> to vector<8x64xf32>
    %37 = arith.addf %35, %36 : vector<8x64xf32>
    %c0_13 = arith.constant 0 : index
    %c0_14 = arith.constant 0 : index
    %c0_15 = arith.constant 0 : index
    %38 = vector.load %arg1[%c0_13, %c0_14, %c0_15] : memref<1x8x64xf32, #tpu.memory_space<vmem>>, vector<1x8x64xf32>
    %39 = vector.shape_cast %38 : vector<1x8x64xf32> to vector<8x64xf32>
    %40 = arith.addf %39, %37 : vector<8x64xf32>
    %cst_16 = arith.constant dense<0.000000e+00> : vector<8x64xf32>
    %41 = tpu.matmul %40, %11, %cst_16 {dimension_numbers = #tpu.dot_dimension_numbers<[1], [0], [0], [1], [0, 0, 1, 1], [], []>} : vector<8x64xf32>, vector<64x64xf32>, vector<8x64xf32> -> vector<8x64xf32>
    %42 = vector.broadcast %3 : vector<1x64xf32> to vector<8x64xf32>
    %43 = arith.addf %41, %42 : vector<8x64xf32>
    %cst_17 = arith.constant dense<0.000000e+00> : vector<64xf32>
    %44 = vector.multi_reduction <add>, %43, %cst_17 [0] : vector<8x64xf32> to vector<64xf32>
    %45 = vector.shape_cast %44 : vector<64xf32> to vector<1x64xf32>
    %cst_18 = arith.constant 1.250000e-01 : f32
    %46 = vector.broadcast %cst_18 : f32 to vector<1x64xf32>
    %47 = arith.mulf %45, %46 : vector<1x64xf32>
    %48 = vector.broadcast %47 : vector<1x64xf32> to vector<8x64xf32>
    %49 = arith.subf %43, %48 : vector<8x64xf32>
    %50 = arith.mulf %49, %49 : vector<8x64xf32>
    %cst_19 = arith.constant dense<0.000000e+00> : vector<64xf32>
    %51 = vector.multi_reduction <add>, %50, %cst_19 [0] : vector<8x64xf32> to vector<64xf32>
    %52 = vector.shape_cast %51 : vector<64xf32> to vector<1x64xf32>
    %cst_20 = arith.constant 1.250000e-01 : f32
    %53 = vector.broadcast %cst_20 : f32 to vector<1x64xf32>
    %54 = arith.mulf %52, %53 : vector<1x64xf32>
    %cst_21 = arith.constant 9.99999974E-6 : f32
    %55 = vector.broadcast %cst_21 : f32 to vector<1x64xf32>
    %56 = arith.addf %54, %55 : vector<1x64xf32>
    %57 = math.rsqrt %56 : vector<1x64xf32>
    %58 = vector.broadcast %57 : vector<1x64xf32> to vector<8x64xf32>
    %59 = arith.mulf %49, %58 : vector<8x64xf32>
    %cst_22 = arith.constant 0.000000e+00 : f32
    %60 = vector.broadcast %cst_22 : f32 to vector<8x64xf32>
    %61 = arith.subf %60, %59 : vector<8x64xf32>
    %62 = math.exp %61 : vector<8x64xf32>
    %cst_23 = arith.constant 1.000000e+00 : f32
    %63 = vector.broadcast %cst_23 : f32 to vector<8x64xf32>
    %64 = arith.addf %63, %62 : vector<8x64xf32>
    %cst_24 = arith.constant 1.000000e+00 : f32
    %65 = vector.broadcast %cst_24 : f32 to vector<8x64xf32>
    %66 = arith.divf %65, %64 : vector<8x64xf32>
    %67 = arith.mulf %59, %66 : vector<8x64xf32>
    %cst_25 = arith.constant dense<0.000000e+00> : vector<8x64xf32>
    %68 = tpu.matmul %67, %12, %cst_25 {dimension_numbers = #tpu.dot_dimension_numbers<[1], [0], [0], [1], [0, 0, 1, 1], [], []>} : vector<8x64xf32>, vector<64x64xf32>, vector<8x64xf32> -> vector<8x64xf32>
    %69 = vector.broadcast %4 : vector<1x64xf32> to vector<8x64xf32>
    %70 = arith.addf %68, %69 : vector<8x64xf32>
    %c0_26 = arith.constant 0 : index
    %c0_27 = arith.constant 0 : index
    %c0_28 = arith.constant 0 : index
    %71 = vector.load %arg6[%c0_26, %c0_27, %c0_28] : memref<1x8x64xf32, #tpu.memory_space<vmem>>, vector<1x8x64xf32>
    %72 = vector.shape_cast %71 : vector<1x8x64xf32> to vector<8x64xf32>
    %73 = vector.shape_cast %70 : vector<8x64xf32> to vector<1x8x64xf32>
    tpu.vector_store %arg6[%c0_26, %c0_27, %c0_28], %73 {strides = array<i32>} : memref<1x8x64xf32, #tpu.memory_space<vmem>>, vector<1x8x64xf32>,
    return
  }
  func.func @transform_0(%arg0: i32) -> (i32, i32, i32) {
    %c0_i32 = arith.constant 0 : i32
    %c0_i32_0 = arith.constant 0 : i32
    %c0_i32_1 = arith.constant 0 : i32
    return %arg0, %c0_i32, %c0_i32_0 : i32, i32, i32
  }
  func.func @transform_1(%arg0: i32) -> (i32, i32, i32) {
    %c0_i32 = arith.constant 0 : i32
    %c0_i32_0 = arith.constant 0 : i32
    %c0_i32_1 = arith.constant 0 : i32
    return %arg0, %c0_i32, %c0_i32_0 : i32, i32, i32
  }
  func.func @transform_2(%arg0: i32) -> (i32, i32) {
    %c0_i32 = arith.constant 0 : i32
    %c0_i32_0 = arith.constant 0 : i32
    %c0_i32_1 = arith.constant 0 : i32
    return %c0_i32, %c0_i32_0 : i32, i32
  }
  func.func @transform_3(%arg0: i32) -> (i32, i32) {
    %c0_i32 = arith.constant 0 : i32
    %c0_i32_0 = arith.constant 0 : i32
    %c0_i32_1 = arith.constant 0 : i32
    return %c0_i32, %c0_i32_0 : i32, i32
  }
  func.func @transform_4(%arg0: i32) -> (i32, i32) {
    %c0_i32 = arith.constant 0 : i32
    %c0_i32_0 = arith.constant 0 : i32
    %c0_i32_1 = arith.constant 0 : i32
    return %c0_i32, %c0_i32_0 : i32, i32
  }
  func.func @transform_5(%arg0: i32) -> (i32, i32, i32) {
    %c0_i32 = arith.constant 0 : i32
    %c0_i32_0 = arith.constant 0 : i32
    %c0_i32_1 = arith.constant 0 : i32
    return %arg0, %c0_i32, %c0_i32_0 : i32, i32, i32
  }
}

</mosaic_0001>

<bundles_post_ra>
// kernel: tpu_custom_call.1
= control target key start
LH: loop header
LB: loop body
LE: loop exit
PB: predicated region body
PF: predicated region fallthrough
CT: control target
= control target key end

     0   :  { %v1057_v1 = vmov 0   ;;  %s1262_s0 = inlined_call_operand.vmem [shape: f32[1,8,64], index: 0, kind: input, shape index: {}]   ;;  %s1263_s1 = inlined_call_operand.vmem [shape: f32[1,8,1], index: 1, kind: input, shape index: {}]   ;;  %s1264_s2 = inlined_call_operand.vmem [shape: bf16[128,64], index: 2, kind: input, shape index: {}]   ;;  %s1265_s3 = inlined_call_operand.vmem [shape: bf16[192,64], index: 3, kind: input, shape index: {}]   ;;  %s1266_s4 = inlined_call_operand.vmem [shape: f32[5,64], index: 4, kind: input, shape index: {}]   ;;  %s1267_s5 = inlined_call_operand.hbm [shape: f32[1,8,64], index: 5, kind: output, shape index: {}]  }
   0x1   :  { %v102_v0 = vld [vmem:[%s1263_s1] sm:$0xff]  ;;  %1020 = vset.pattern.permute.xlu0 %v1057_v1 }
   0x2   :  { %105 = vperm.xlu0 %1020, %v102_v0  }
   0x3   :  { %10 = vsyncpa [#allocation3], 0  ;;  %v854_v2 = vld [vmem:[%s1264_s2 + $0x38] sm:$0xff]   ;;  %v853_v4 = vld [vmem:[%s1264_s2 + $0x30] sm:$0xff]   ;;  %v1058_v5 = vmov 0.0   ;;  %vm1059_vm0 = vmmov 0   ;;  %v108_v27 = vlaneseq }
   0x4   :  { %v850_v3 = vld [vmem:[%s1264_s2 + $0x18] sm:$0xff]   ;;  %911 = vmatprep.subr.mxu0 %v1058_v5  ;;  %930 = vmatprep.subr.mxu1 %v1058_v5  ;;  %v798_v6 = vunpack.c.l.bf16 %v854_v2  ;;  %v799_v7 = vunpack.c.h.bf16 %v854_v2  ;;  %v849_v10 = vld [vmem:[%s1264_s2 + $0x10] sm:$0xff]   ;;  %v795_v11 = vunpack.c.h.bf16 %v853_v4  ;;  %v852_v13 = vld [vmem:[%s1264_s2 + $0x28] sm:$0xff]   ;;  %v794_v15 = vunpack.c.l.bf16 %v853_v4 }
   0x5   :  { %v782_v8 = vunpack.c.l.bf16 %v850_v3  ;;  %v783_v9 = vunpack.c.h.bf16 %v850_v3  ;;  %927 = vmatprep.mubr.msk.f32.mxu0 %vm1059_vm0, %v1058_v5  ;;  %946 = vmatprep.mubr.msk.f32.mxu1 %vm1059_vm0, %v1058_v5  ;;  %v779_v12 = vunpack.c.h.bf16 %v849_v10  ;;  %v848_v14 = vld [vmem:[%s1264_s2 + $0x8] sm:$0xff]   ;;  %v778_v16 = vunpack.c.l.bf16 %v849_v10  ;;  %v851_v19 = vld [vmem:[%s1264_s2 + $0x20] sm:$0xff]  }
   0x6   :  { %912 = vmatpush3.msra.mxu0 %v799_v7  ;;  %v791_v17 = vunpack.c.h.bf16 %v852_v13  ;;  %v775_v18 = vunpack.c.h.bf16 %v848_v14  ;;  %v769_v20 = vld [vmem:[%s1264_s2] sm:$0xff]   ;;  %v790_v21 = vunpack.c.l.bf16 %v852_v13  ;;  %v774_v22 = vunpack.c.l.bf16 %v848_v14 }
   0x7   :  { %931 = vmatpush3.msra.mxu1 %v783_v9  ;;  %913 = vmatprep.subr.mxu0 %v1058_v5  ;;  %v787_v23 = vunpack.c.h.bf16 %v851_v19  ;;  %v771_v24 = vunpack.c.h.bf16 %v769_v20  ;;  %v786_v25 = vunpack.c.l.bf16 %v851_v19  ;;  %v770_v26 = vunpack.c.l.bf16 %v769_v20  ;;  %v1152_v30 = vld [vmem:[%s1266_s4] sm:$0x1f] }
   0x8   :  { %932 = vmatprep.subr.mxu1 %v1058_v5  ;;  %914 = vmatpush3.msra.mxu0 %v798_v6  ;;  %v1146_v28 = vshrl.u32 %v108_v27, 7  ;;  %v1060_v44 = vmov 683565275   ;;  %v1061_v46 = vmov 2475754826   ;;  %vm320_vm11 = vcmask 523264  }
   0x9   :  { %933 = vmatpush3.msra.mxu1 %v782_v8  ;;  %915 = vmatprep.subr.mxu0 %v1058_v5  ;;  %v1062_v49 = vmov 2131351028   ;;  %v1063_v52 = vmov 2102212464   ;;  %v1064_v55 = vmov 920167782  }
   0xa   :  { %934 = vmatprep.subr.mxu1 %v1058_v5  ;;  %916 = vmatpush3.msra.mxu0 %v795_v11  ;;  %v110_v29 = vsub.s32 4, %v1146_v28  ;;  %v1065_v58 = vmov 1326507024  }
   0xb   :  { %935 = vmatpush3.msra.mxu1 %v779_v12  ;;  %917 = vmatprep.subr.mxu0 %v1058_v5 }
   0xc   :  { %936 = vmatprep.subr.mxu1 %v1058_v5  ;;  %918 = vmatpush3.msra.mxu0 %v794_v15  ;;  %v111_v31 = vrot.slane %v1152_v30, %v110_v29 }
   0xd   :  { %937 = vmatpush3.msra.mxu1 %v778_v16  ;;  %919 = vmatprep.subr.mxu0 %v1058_v5 }
   0xe   :  { %938 = vmatprep.subr.mxu1 %v1058_v5  ;;  %920 = vmatpush3.msra.mxu0 %v791_v17 }
   0xf   :  { %939 = vmatpush3.msra.mxu1 %v775_v18  ;;  %921 = vmatprep.subr.mxu0 %v1058_v5 }
  0x10   :  { %940 = vmatprep.subr.mxu1 %v1058_v5  ;;  %922 = vmatpush3.msra.mxu0 %v790_v21 }
  0x11   :  { %941 = vmatpush3.msra.mxu1 %v774_v22  ;;  %923 = vmatprep.subr.mxu0 %v1058_v5 }
  0x12   :  { %942 = vmatprep.subr.mxu1 %v1058_v5  ;;  %924 = vmatpush3.msra.mxu0 %v787_v23 }
  0x13   :  { %943 = vmatpush3.msra.mxu1 %v771_v24  ;;  %925 = vmatprep.subr.mxu0 %v1058_v5 }
  0x14   :  { %944 = vmatprep.subr.mxu1 %v1058_v5  ;;  %926 = vmatpush3.msra.mxu0 %v786_v25 }
  0x15   :  { %945 = vmatpush3.msra.mxu1 %v770_v26  ;;  %949 = vmatprep.subr.mxu0 %v1058_v5 }
  0x16   :  { %968 = vmatprep.subr.mxu1 %v1058_v5 }
  0x7d   :  { %v106_v32 = vpop.permute.xlu0 %105 }
  0x7e   :  { %v1155_v33 = vmul.f32 %v111_v31, %v106_v32 }
  0x80   :  { %v116_v34 = vand.u32 2139095040, %v1155_v33  ;;  %v113_v38 = vand.u32 2147483647, %v1155_v33  ;;  %vm115_vm8 = vcmp.lt.s32.totalorder %v1155_v33, 0 }
  0x82   :  { %v117_v35 = vshrl.u32 %v116_v34, 23  ;;  %v120_v41 = vand.u32 8388607, %v113_v38  ;;  %vm114_vm9 = vcmp.le.f32.partialorder %v113_v38, 0.7853982 }
  0x84   :  { %v755_v36 = vadd.s32 4294967169, %v117_v35  ;;  %v121_v60 = vor.u32 8388608, %v120_v41 }
  0x86   :  { %v123_v37 = vadd.s32 1, %v755_v36  ;;  %v161_v11 = vshll.u32 %v121_v60, 8 }
  0x88   :  { %vm124_vm1 = vcmp.gt.s32.totalorder %v123_v37, 0 }
  0x89   :  { %v125_v39 = vsel %vm124_vm1, %v123_v37, 0 }
  0x8a   :  { %v127_v40 = vand.u32 31, %v125_v39  ;;  %v126_v43 = vshrl.u32 %v125_v39, 5 }
  0x8c   :  { %v128_v42 = vsub.s32 32, %v127_v40  ;;  %v130_v45 = vshll.u32 %v1060_v44, %v127_v40  ;;  %v133_v47 = vshll.u32 %v1061_v46, %v127_v40  ;;  %v136_v51 = vshll.u32 %v1062_v49, %v127_v40 }
  0x8d   :  { %v139_v54 = vshll.u32 %v1063_v52, %v127_v40  ;;  %v142_v57 = vshll.u32 %v1064_v55, %v127_v40  ;;  %vm145_vm2 = vcmp.lt.s32.totalorder %v126_v43, 1  ;;  %vm148_vm3 = vcmp.lt.s32.totalorder %v126_v43, 4 }
  0x8e   :  { %v131_v48 = vshrl.u32 %v1061_v46, %v128_v42  ;;  %v134_v50 = vshrl.u32 %v1062_v49, %v128_v42  ;;  %v137_v53 = vshrl.u32 %v1063_v52, %v128_v42  ;;  %v140_v56 = vshrl.u32 %v1064_v55, %v128_v42 }
  0x8f   :  { %v143_v59 = vshrl.u32 %v1065_v58, %v128_v42  ;;  %v129_v6 = vshrl.u32 %v1060_v44, %v128_v42  ;;  %vm147_vm4 = vcmp.lt.s32.totalorder %v126_v43, 3  ;;  %vm146_vm5 = vcmp.lt.s32.totalorder %v126_v43, 2 }
  0x90   :  { %v132_v61 = vor.u32 %v131_v48, %v130_v45  ;;  %v135_v62 = vor.u32 %v134_v50, %v133_v47  ;;  %v138_v63 = vor.u32 %v137_v53, %v136_v51  ;;  %v141_v0 = vor.u32 %v140_v56, %v139_v54 }
  0x91   :  { %v144_v1 = vor.u32 %v143_v59, %v142_v57 }
  0x92   :  { %v150_v2 = vsel %vm148_vm3, %v138_v63, 2102212464  ;;  %v153_v3 = vsel %vm145_vm2, %v132_v61, %v135_v62  ;;  %v157_v4 = vsel %vm145_vm2, %v135_v62, %v138_v63  ;;  %v154_v7 = vsel %vm148_vm3, %v141_v0, 920167782 }
  0x93   :  { %v158_v8 = vsel %vm148_vm3, %v144_v1, 1326507024  ;;  %v155_v9 = vsel %vm147_vm4, %v138_v63, %v154_v7  ;;  %v149_v12 = vsel %vm145_vm2, %v129_v6, %v132_v61  ;;  %v151_v13 = vsel %vm147_vm4, %v135_v62, %v150_v2  ;;  %v857_v7 = vld [vmem:[%s1265_s3 + $0x18] sm:$0xff]  }
  0x94   :  { %v159_v10 = vsel %vm147_vm4, %v141_v0, %v158_v8  ;;  %v156_v14 = vsel %vm146_vm5, %v153_v3, %v155_v9  ;;  %v152_v20 = vsel %vm146_vm5, %v149_v12, %v151_v13  ;;  %vm205_vm2 = vweird.f32 %v1155_v33  ;;  %v856_v9 = vld [vmem:[%s1265_s3 + $0x10] sm:$0xff]   ;;  %v855_v12 = vld [vmem:[%s1265_s3 + $0x8] sm:$0xff]  }
  0x95   :  { %v160_v15 = vsel %vm146_vm5, %v157_v4, %v159_v10  ;;  %v1164_v18 = vmul.u32.u64.low %v161_v11, %v156_v14  ;;  %v1165_v19 = vmul.u32.u64.high %v161_v11, %v156_v14, %v1164_v18  ;;  %v168_v22 = vmul.u32 %v161_v11, %v152_v20 }
  0x96   :  { %v1161_v16 = vmul.u32.u64.low %v161_v11, %v160_v15  ;;  %v1162_v17 = vmul.u32.u64.high %v161_v11, %v160_v15, %v1161_v16  ;;  %v815_v8 = vunpack.c.h.bf16 %v857_v7  ;;  %v811_v10 = vunpack.c.h.bf16 %v856_v9  ;;  %v801_v15 = vld [vmem:[%s1265_s3] sm:$0xff]  }
  0x97   :  { %v171_v21 = vadd.s32 1, %v1165_v19  ;;  %v810_v11 = vunpack.c.l.bf16 %v856_v9  ;;  %v807_v13 = vunpack.c.h.bf16 %v855_v12  ;;  %v806_v14 = vunpack.c.l.bf16 %v855_v12 }
  0x98   :  { %vm170_vm6 = vc.u32 %v1162_v17, %v1164_v18  ;;  %v169_v37 = vadd.s32 %v1164_v18, %v1162_v17  ;;  %v803_v16 = vunpack.c.h.bf16 %v801_v15  ;;  %v802_v17 = vunpack.c.l.bf16 %v801_v15  ;;  %v861_v18 = vld [vmem:[%s1265_s3 + $0x38] sm:$0xff]  }
  0x99   :  { %v172_v23 = vsel %vm170_vm6, %v171_v21, %v1165_v19  ;;  %v860_v19 = vld [vmem:[%s1265_s3 + $0x30] sm:$0xff]   ;;  %v831_v20 = vunpack.c.h.bf16 %v861_v18  ;;  %v830_v21 = vunpack.c.l.bf16 %v861_v18 }
  0x9a   :  { %v173_v24 = vadd.s32 %v172_v23, %v168_v22  ;;  %v827_v22 = vunpack.c.h.bf16 %v860_v19  ;;  %v859_v23 = vld [vmem:[%s1265_s3 + $0x28] sm:$0xff]  }
  0x9c   :  { %v174_v25 = vadd.s32 536870912, %v173_v24 }
  0x9e   :  { %v175_v26 = vshrl.u32 %v174_v25, 30  ;;  %v823_v25 = vunpack.c.h.bf16 %v859_v23 }
  0xa0   :  { %v176_v27 = vshll.u32 %v175_v26, 30  ;;  %v199_v51 = vsub.s32 4, %v175_v26 }
  0xa2   :  { %v177_v29 = vsub.s32 %v173_v24, %v176_v27  ;;  %v200_v54 = vsel %vm115_vm8, %v199_v51, %v175_v26  ;;  %v826_v24 = vunpack.c.l.bf16 %v860_v19  ;;  %v469_v26 = vsub.s32 0, %v1146_v28  ;;  %v556_v51 = vld [vmem:[%s1262_s0] sm:$0xff] }
  0xa3   :  { %v202_v55 = vsel %vm114_vm9, 0, %v200_v54 }
  0xa4   :  { %v179_v31 = vsub.s32 0, %v177_v29  ;;  %v309_v56 = vadd.s32 3, %v202_v55  ;;  %v206_v58 = vand.u32 3, %v202_v55  ;;  %v470_v27 = vrot.slane %v1152_v30, %v469_v26  ;;  %v865_v55 = vld [vmem:[%s1265_s3 + $0x58] sm:$0xff]  }
  0xa6   :  { %v756_v32 = vmin.u32 %v179_v31, %v177_v29  ;;  %v310_v57 = vand.u32 3, %v309_v56  ;;  %vm211_vm12 = vcmp.eq.s32.totalorder %v206_v58, 2  ;;  %vm208_vm14 = vcmp.eq.s32.totalorder %v206_v58, 0 }
  0xa7   :  { %vm207_vm1 = vcmp.lt.s32.totalorder %v206_v58, 2  ;;  %v847_v56 = vunpack.c.h.bf16 %v865_v55  ;;  %v864_v58 = vld [vmem:[%s1265_s3 + $0x50] sm:$0xff]  }
  0xa8   :  { %v181_v34 = vclz %v756_v32  ;;  %vm315_vm10 = vcmp.eq.s32.totalorder %v310_v57, 2  ;;  %vm312_vm13 = vcmp.eq.s32.totalorder %v310_v57, 0  ;;  %vm311_vm15 = vcmp.lt.s32.totalorder %v310_v57, 2 }
  0xa9   :  { %v846_v57 = vunpack.c.l.bf16 %v865_v55 }
  0xaa   :  { %v757_v35 = vadd.s32 4294967294, %v181_v34 }
  0xac   :  { %vm758_vm7 = vcmp.lt.s32.totalorder %v757_v35, 0 }
  0xad   :  { %v184_v36 = vsel %vm758_vm7, 0, %v757_v35 }
  0xae   :  { %v185_v39 = vsub.s32 32, %v184_v36  ;;  %v189_v40 = vsub.s32 4294967266, %v184_v36  ;;  %v186_v41 = vshll.u32 %v177_v29, %v184_v36 }
  0xb0   :  { %v187_v42 = vshrl.u32 %v169_v37, %v185_v39  ;;  %v190_v43 = vadd.s32 127, %v189_v40 }
  0xb2   :  { %v188_v44 = vor.u32 %v187_v42, %v186_v41  ;;  %v191_v45 = vshll.u32 %v190_v43, 23 }
  0xb4   :  { %v192_v46 = vor.u32 4788187, %v191_v45  ;;  %v195_v48 = vcvt.s32.f32 %v188_v44  ;;  %v822_v44 = vunpack.c.l.bf16 %v859_v23  ;;  %v858_v45 = vld [vmem:[%s1265_s3 + $0x20] sm:$0xff]  }
  0xb6   :  { %v193_v47 = vand.u32 2147483647, %v192_v46  ;;  %v819_v46 = vunpack.c.h.bf16 %v858_v45 }
  0xb8   :  { %v196_v49 = vmul.f32 %v195_v48, %v193_v47  ;;  %v818_v47 = vunpack.c.l.bf16 %v858_v45  ;;  %v481_v48 = vsub.s32 1, %v1146_v28 }
  0xba   :  { %v197_v50 = vxor.u32 2147483648, %v196_v49 }
  0xbc   :  { %v198_v52 = vsel %vm115_vm8, %v197_v50, %v196_v49  ;;  %v482_v49 = vrot.slane %v1152_v30, %v481_v48 }
  0xbd   :  { %v201_v53 = vsel %vm114_vm9, %v1155_v33, %v198_v52  ;;  %v814_v33 = vunpack.c.l.bf16 %v857_v7 }
  0xbe   :  { %1021 = vcosq.f32 %v201_v53 }
  0xbf   :  { %1023 = vsinq.f32 %v201_v53 }
  0xcb   :  { %v1022_v59 = vpop.eup %1021 }
  0xcc   :  { %v1024_v60 = vpop.eup %1023  ;;  %v212_v61 = vxor.u32 2147483648, %v1022_v59 }
  0xcd   :  { %v209_v62 = vxor.u32 2147483648, %v1024_v60 }
  0xce   :  { %v317_v63 = vsel %vm315_vm10, %v212_v61, %v1024_v60  ;;  %v213_v38 = vsel %vm211_vm12, %v212_v61, %v1024_v60  ;;  %v842_v60 = vunpack.c.l.bf16 %v864_v58  ;;  %v863_v61 = vld [vmem:[%s1265_s3 + $0x48] sm:$0xff]  }
  0xcf   :  { %v314_v0 = vsel %vm312_vm13, %v1022_v59, %v209_v62  ;;  %v210_v1 = vsel %vm208_vm14, %v1022_v59, %v209_v62  ;;  %v843_v59 = vunpack.c.h.bf16 %v864_v58  ;;  %v839_v62 = vunpack.c.h.bf16 %v863_v61 }
  0xd0   :  { %v318_v2 = vsel %vm311_vm15, %v314_v0, %v317_v63  ;;  %v214_v3 = vsel %vm207_vm1, %v210_v1, %v213_v38  ;;  %v838_v63 = vunpack.c.l.bf16 %v863_v61  ;;  %v862_v38 = vld [vmem:[%s1265_s3 + $0x40] sm:$0xff]   ;;  %s1066_s3 = smov [#allocation2]  }
  0xd1   :  { %v319_v4 = vsel %vm205_vm2, nan, %v318_v2  ;;  %v215_v6 = vsel %vm205_vm2, nan, %v214_v3  ;;  %v835_v0 = vunpack.c.h.bf16 %v862_v38  ;;  %v834_v1 = vunpack.c.l.bf16 %v862_v38  ;;  %s747_s9 = sshll.u32 %s1066_s3, 4  ;;  %s748_s9 = int_to_ptr.vmem [resolvable:$true] %s747_s9 }
  0xd2   :  { %928 = vmatmul.mubr.msk.f32.vlgmr.msra.gmra.mxu0 %vm320_vm11, %v319_v4  ;;  %947 = vmatmul.mubr.msk.f32.vlgmr.msra.gmra.mxu1 %vm320_vm11, %v215_v6  ;;  %v560_v2 = vsub.s32 2, %v1146_v28  ;;  %s1035_s2 = scalar_lea.vmem %s748_s9, 128  ;;  %p1040_p1 = scmp.lt.s32.totalorder %s748_s9, %s748_s9 }
  0xd3   :  { %965 = vmatprep.mubr.msk.f32.mxu0 %vm1059_vm0, %v1058_v5  ;;  %984 = vmatprep.mubr.msk.f32.mxu1 %vm1059_vm0, %v1058_v5  ;;  %p1036_p0 = scmp.ne.s32.totalorder %s748_s9, %s1035_s2  ;;  %p1041_p2 = scmp.lt.s32.totalorder %s1035_s2, %s1035_s2 }
  0xd4   :  { %950 = vmatpush3.msra.mxu0 %v815_v8  ;;  %969 = vmatpush3.msra.mxu1 %v831_v20  ;;  %v561_v3 = vrot.slane %v1152_v30, %v560_v2 }
  0xd5   :  { %951 = vmatprep.subr.mxu0 %v1058_v5  ;;  %970 = vmatprep.subr.mxu1 %v1058_v5  ;;  %p1042_p3 = por %p1041_p2, %p1040_p1 }
  0xd6   :  { %952 = vmatpush3.msra.mxu0 %v814_v33  ;;  %971 = vmatpush3.msra.mxu1 %v830_v21 }
  0xd7   :  { %953 = vmatprep.subr.mxu0 %v1058_v5  ;;  %972 = vmatprep.subr.mxu1 %v1058_v5  ;;  %p1043_p4 = pnand %p1042_p3, %p1036_p0 }
  0xd8   :  { %954 = vmatpush3.msra.mxu0 %v811_v10  ;;  %973 = vmatpush3.msra.mxu1 %v827_v22 }
  0xd9   :  { %955 = vmatprep.subr.mxu0 %v1058_v5  ;;  %974 = vmatprep.subr.mxu1 %v1058_v5 }
  0xda   :  { %956 = vmatpush3.msra.mxu0 %v810_v11  ;;  %975 = vmatpush3.msra.mxu1 %v826_v24 }
  0xdb   :  { %957 = vmatprep.subr.mxu0 %v1058_v5  ;;  %976 = vmatprep.subr.mxu1 %v1058_v5 }
  0xdc   :  { %958 = vmatpush3.msra.mxu0 %v807_v13  ;;  %977 = vmatpush3.msra.mxu1 %v823_v25 }
  0xdd   :  { %959 = vmatprep.subr.mxu0 %v1058_v5  ;;  %978 = vmatprep.subr.mxu1 %v1058_v5 }
  0xde   :  { %960 = vmatpush3.msra.mxu0 %v806_v14  ;;  %979 = vmatpush3.msra.mxu1 %v822_v44 }
  0xdf   :  { %961 = vmatprep.subr.mxu0 %v1058_v5  ;;  %980 = vmatprep.subr.mxu1 %v1058_v5 }
  0xe0   :  { %962 = vmatpush3.msra.mxu0 %v803_v16  ;;  %981 = vmatpush3.msra.mxu1 %v819_v46 }
  0xe1   :  { %963 = vmatprep.subr.mxu0 %v1058_v5  ;;  %982 = vmatprep.subr.mxu1 %v1058_v5 }
  0xe2   :  { %964 = vmatpush3.msra.mxu0 %v802_v17  ;;  %983 = vmatpush3.msra.mxu1 %v818_v47 }
  0xe3   :  { %987 = vmatprep.subr.mxu0 %v1058_v5 }
 0x192   :  { %v390_v29 = vpop.f32.mrf.mxu0  ;;  %v463_v31 = vpop.f32.mrf.mxu1 }
 0x193   :  { %v464_v32 = vadd.f32 %v463_v31, %v390_v29 }
 0x194   :  { %v929_v34 = vpop.f32.mrf.mxu0  ;;  %v948_v35 = vpop.f32.mrf.mxu1 }
 0x195   :  { %v471_v36 = vadd.f32 %v470_v27, %v464_v32 }
 0x197   :  { %v472_v37 = vsub.f32 0.0, %v471_v36 }
 0x199   :  { %v473_v39 = vmul.f32 1.442695, %v472_v37 }
 0x19b   :  { %1025 = vpow2.f32 %v473_v39 }
 0x1a8   :  { %v1026_v40 = vpop.eup %1025 }
 0x1a9   :  { %v475_v41 = vadd.f32 1.0, %v1026_v40 }
 0x1ab   :  { %1027 = vrcp.f32 %v475_v41 }
 0x1b8   :  { %v1028_v42 = vpop.eup %1027 }
 0x1b9   :  { %v478_v43 = vmul.f32 %v1028_v42, %v471_v36  ;;  %v665_v36 = vsub.s32 3, %v1146_v28 }
 0x1bb   :  { %966 = vmatmul.mubr.msk.f32.vlgmr.msra.gmra.mxu0 %vm320_vm11, %v478_v43  ;;  %v666_v37 = vrot.slane %v1152_v30, %v665_v36 }
 0x1bc   :  { %1003 = vmatprep.mubr.msk.f32.mxu0 %vm1059_vm0, %v1058_v5  ;;  %988 = vmatpush3.msra.mxu0 %v847_v56 }
 0x1bd   :  { %989 = vmatprep.subr.mxu0 %v1058_v5 }
 0x1be   :  { %990 = vmatpush3.msra.mxu0 %v846_v57 }
 0x1bf   :  { %991 = vmatprep.subr.mxu0 %v1058_v5 }
 0x1c0   :  { %992 = vmatpush3.msra.mxu0 %v843_v59 }
 0x1c1   :  { %993 = vmatprep.subr.mxu0 %v1058_v5 }
 0x1c2   :  { %994 = vmatpush3.msra.mxu0 %v842_v60 }
 0x1c3   :  { %995 = vmatprep.subr.mxu0 %v1058_v5 }
 0x1c4   :  { %996 = vmatpush3.msra.mxu0 %v839_v62 }
 0x1c5   :  { %997 = vmatprep.subr.mxu0 %v1058_v5 }
 0x1c6   :  { %998 = vmatpush3.msra.mxu0 %v838_v63 }
 0x1c7   :  { %999 = vmatprep.subr.mxu0 %v1058_v5 }
 0x1c8   :  { %1000 = vmatpush3.msra.mxu0 %v835_v0 }
 0x1c9   :  { %1001 = vmatprep.subr.mxu0 %v1058_v5 }
 0x1ca   :  { %1002 = vmatpush3.msra.mxu0 %v834_v1 }
 0x27b   :  { %v552_v50 = vpop.f32.mrf.mxu0 }
 0x27c   :  { %v553_v52 = vadd.f32 %v552_v50, %v482_v49 }
 0x27d   :  { %v967_v53 = vpop.f32.mrf.mxu0 }
 0x27e   :  { %v557_v54 = vadd.f32 %v556_v51, %v553_v52 }
 0x280   :  { %985 = vmatmul.mubr.msk.f32.vlgmr.msra.gmra.mxu1 %vm320_vm11, %v557_v54 }
 0x340   :  { %v631_v4 = vpop.f32.mrf.mxu1 }
 0x341   :  { %v632_v6 = vadd.f32 %v631_v4, %v561_v3 }
 0x342   :  { %v986_v7 = vpop.f32.mrf.mxu1 }
 0x343   :  { %v635_v8 = vsel %vm320_vm11, %v632_v6, 0.0 }
 0x344   :  { %v636_v33 = vrot.slane %v635_v8, 4 }
 0x346   :  { %v637_v9 = vadd.f32 %v636_v33, %v635_v8 }
 0x348   :  { %v638_v10 = vrot.slane %v637_v9, 2 }
 0x34a   :  { %v639_v11 = vadd.f32 %v638_v10, %v637_v9 }
 0x34c   :  { %v640_v12 = vrot.slane %v639_v11, 1 }
 0x34e   :  { %v641_v13 = vadd.f32 %v640_v12, %v639_v11 }
 0x350   :  { %v642_v14 = vmul.f32 0.125, %v641_v13 }
 0x352   :  { %v643_v15 = vsub.f32 %v632_v6, %v642_v14 }
 0x354   :  { %v644_v16 = vmul.f32 %v643_v15, %v643_v15 }
 0x356   :  { %v645_v5 = vsel %vm320_vm11, %v644_v16, 0.0 }
 0x357   :  { %v646_v17 = vrot.slane %v645_v5, 4 }
 0x359   :  { %v647_v18 = vadd.f32 %v646_v17, %v645_v5 }
 0x35b   :  { %v648_v19 = vrot.slane %v647_v18, 2 }
 0x35d   :  { %v649_v20 = vadd.f32 %v648_v19, %v647_v18 }
 0x35f   :  { %v650_v21 = vrot.slane %v649_v20, 1 }
 0x361   :  { %v651_v22 = vadd.f32 %v650_v21, %v649_v20 }
 0x363   :  { %v652_v23 = vmul.f32 0.125, %v651_v22 }
 0x365   :  { %v653_v24 = vadd.f32 1e-05, %v652_v23 }
 0x367   :  { %1029 = vrsqrt.f32 %v653_v24 }
 0x374   :  { %v1030_v25 = vpop.eup %1029 }
 0x375   :  { %v655_v26 = vmul.f32 %v1030_v25, %v643_v15 }
 0x377   :  { %v656_v27 = vsub.f32 0.0, %v655_v26 }
 0x379   :  { %v657_v29 = vmul.f32 1.442695, %v656_v27 }
 0x37b   :  { %1031 = vpow2.f32 %v657_v29 }
 0x388   :  { %v1032_v31 = vpop.eup %1031 }
 0x389   :  { %v659_v32 = vadd.f32 1.0, %v1032_v31 }
 0x38b   :  { %1033 = vrcp.f32 %v659_v32 }
 0x398   :  { %v1034_v34 = vpop.eup %1033 }
 0x399   :  { %v662_v35 = vmul.f32 %v1034_v34, %v655_v26 }
 0x39b   :  { %1004 = vmatmul.mubr.msk.f32.vlgmr.msra.gmra.mxu0 %vm320_vm11, %v662_v35 }
 0x45b   :  { %v736_v39 = vpop.f32.mrf.mxu0 }
 0x45c   :  { %v737_v40 = vadd.f32 %v736_v39, %v666_v37 }
 0x45d   :  { %v1005_v41 = vpop.f32.mrf.mxu0 }
 0x45e   :  { %740 = vst.msk [vmem:[#allocation2] sm:$0xff] %vm320_vm11, %v737_v40 }
 0x45f   :  { %1046 = shalt.err (!%p1043_p4)
}
 0x460   :  { %750 = dma.vmem_to_hbm [thread:$0]  %s748_s9, 128, %s1267_s5, [#allocation3]  }
 0x461   :  { %1055 = dma.done.wait [#allocation3], 128  }
 0x462   :  { %1056 = vsyncadd [#allocation3], 4294967168 }
 0x463   :  { %754 = vsyncpa [#allocation3], 1 }

</bundles_post_ra>
